<compile_context>
chip_gen: v5e
topology: v5e:2x2
jax: 0.10.0
libtpu: 0.0.40
codegen_flags: <defaults>
</compile_context>

<pallas_src>
import functools

import jax
import jax.numpy as jnp
from jax.experimental import pallas as pl
from jax.experimental.pallas import tpu as pltpu

_NEG_INF = -1e30  # finite "-inf" so padded-lane arithmetic never produces NaN


def _gating_kernel(x_ref, u_ref, w1_ref, b1_ref, w2_ref, b2_ref, out_ref, *,
                   tau: float, hard: bool):
    # ---- gate MLP: Linear(D -> D) (+ folded SNR column) -> ReLU -> Linear(D -> E_pad)
    # bf16 operands on the MXU, f32 accumulation, f32 elementwise everywhere.
    h = jnp.dot(x_ref[...], w1_ref[...],
                preferred_element_type=jnp.float32) + b1_ref[...]
    h = jnp.maximum(h, 0.0)
    logits = jnp.dot(h.astype(w2_ref.dtype), w2_ref[...],
                     preferred_element_type=jnp.float32) + b2_ref[...]
    # padded expert columns already carry a ~-inf bias -> zero softmax mass.

    # ---- Gumbel noise from host-provided uniforms in [0, 1)
    u = u_ref[...]
    gumbel = -jnp.log(-jnp.log(u + 1e-9) + 1e-9)

    # ---- Gumbel-softmax over experts (lane axis)
    z = (logits + gumbel) * jnp.float32(1.0 / tau)
    m = jnp.max(z, axis=-1, keepdims=True)
    e = jnp.exp(z - m)
    # plain divide keeps the kernel portable to interpret mode; on real TPU
    # pl.reciprocal(..., approx=True) would move this onto the EUP slot.
    y = e / jnp.sum(e, axis=-1, keepdims=True)

    if hard:
        # Forward value of the straight-through estimator: one-hot of the max
        # (ties are measure-zero with continuous Gumbel noise; padded columns
        # are ~-inf so they can never win).
        # TODO(synk): straight-through gradient (y_hard - sg(y) + y) is not
        # represented; this kernel is forward-only.
        y = jnp.where(z == m, 1.0, 0.0)

    out_ref[...] = y.astype(out_ref.dtype)


def snr_aware_gating(x, snr, w1, b1, w2, b2, noise_key, *, tau=1.0, hard=False):
    """SNR-aware Gumbel-softmax gating.

    x:   (B, L, D) activations.
    snr: scalar SNR (torch's `snr.expand(B, 1)` only supports a scalar);
         folded into the first-layer bias on the host.
    w1:  (D + 1, D)  first Linear weight, stored as (in, out).
    b1:  (D,)
    w2:  (D, E)      second Linear weight, stored as (in, out).
    b2:  (E,)
    Returns (B*L, E) float32 expert probabilities.
    """
    B, L, D = x.shape
    N = B * L
    E = w2.shape[1]
    E_pad = ((E + 127) // 128) * 128          # lane-dense output width

    # --- token tiling: >=512 rows where possible (HBM-roofline plateau),
    # rounded to the 8-row sublane granule; small N -> a single tile.
    TN = 512
    if N < TN:
        TN = max(8, ((N + 7) // 8) * 8)
    N_pad = ((N + TN - 1) // TN) * TN
    grid = (N_pad // TN,)

    f32 = jnp.float32
    # Fold the SNR column of W1 into the bias:  x @ W1_x + snr * w1_snr + b1.
    w1 = w1.astype(f32)
    w1_x = w1[:D, :]
    b1_eff = (b1.astype(f32) + f32(snr) * w1[D, :]).reshape(1, D)

    # Pad W2/b2 to a lane-dense expert dim; padded bias ~-inf => zero mass.
    w2_pad = jnp.zeros((D, E_pad), f32).at[:, :E].set(w2.astype(f32))
    b2_pad = jnp.full((1, E_pad), _NEG_INF, f32).at[0, :E].set(b2.astype(f32))

    # Token stream in bf16 (halves HBM traffic on the dominant operand);
    # pad the token axis so every grid step sees a full tile.
    x_flat = x.reshape(N, D).astype(jnp.bfloat16)
    x_p = jnp.zeros((N_pad, D), jnp.bfloat16).at[:N, :].set(x_flat)

    # Per-token uniform noise generated on the host (keeps the kernel free of
    # the TPU-only stateful PRNG); every token row gets independent noise, so
    # tiling cannot repeat the Gumbel pattern across tiles.
    u = jax.random.uniform(noise_key, (N_pad, E_pad), dtype=f32)

    kernel = functools.partial(_gating_kernel, tau=float(tau), hard=bool(hard))

    full = lambda i: (0, 0)      # weights / biases: resident, same block each step
    row = lambda i: (i, 0)       # token-tiled streams

    out = pl.pallas_call(
        kernel,
        out_shape=jax.ShapeDtypeStruct((N_pad, E_pad), f32),
        grid=grid,
        in_specs=[
            pl.BlockSpec((TN, D), row),        # x tile (bf16)
            pl.BlockSpec((TN, E_pad), row),    # uniform noise tile (f32)
            pl.BlockSpec((D, D), full),        # W1 (bf16)
            pl.BlockSpec((1, D), full),        # b1 (+ snr fold, f32)
            pl.BlockSpec((D, E_pad), full),    # W2 (bf16, zero-padded)
            pl.BlockSpec((1, E_pad), full),    # b2 (f32, -inf-padded)
        ],
        out_specs=pl.BlockSpec((TN, E_pad), row),
        compiler_params=pltpu.CompilerParams(
            # token axis is embarrassingly parallel -> shard across TCs (v7x).
            dimension_semantics=("parallel",),
            # explicit scoped-VMEM budget; tiles above stay well below this
            # even on v7x's 64 MiB physical VMEM.
            vmem_limit_bytes=48 * 1024 * 1024,
        ),
    )(x_p, u, w1_x.astype(jnp.bfloat16), b1_eff,
      w2_pad.astype(jnp.bfloat16), b2_pad)

    return out[:N, :E]


if __name__ == "__main__":
    # small shapes consistent with the module: (B, L, D) tokens, E experts
    B, L, D, E = 2, 8, 32, 8
    tau = 1.0

    key = jax.random.PRNGKey(0)
    kx, kw1, kb1, kw2, kb2, knoise = jax.random.split(key, 6)

    x = jax.random.normal(kx, (B, L, D), dtype=jnp.float32)
    snr = 10.0  # scalar SNR (the torch code only supports scalar-like snr)

    # parameters stored as (in_features, out_features)
    w1 = jax.random.normal(kw1, (D + 1, D), dtype=jnp.float32) * 0.1
    b1 = jax.random.normal(kb1, (D,), dtype=jnp.float32) * 0.1
    w2 = jax.random.normal(kw2, (D, E), dtype=jnp.float32) * 0.1
    b2 = jax.random.normal(kb2, (E,), dtype=jnp.float32) * 0.1

    # soft gating
    y = snr_aware_gating(x, snr, w1, b1, w2, b2, knoise, tau=tau, hard=False)
    y = jax.block_until_ready(y)
    assert y.shape == (B * L, E)
    row_sums = jnp.sum(y, axis=-1)
    assert jnp.allclose(row_sums, jnp.ones_like(row_sums), atol=1e-3)
    assert bool(jnp.all(y >= 0.0))

    # hard gating: each token's selected expert has weight exactly 1
    y_hard = snr_aware_gating(x, snr, w1, b1, w2, b2, knoise, tau=tau, hard=True)
    y_hard = jax.block_until_ready(y_hard)
    assert y_hard.shape == (B * L, E)
    assert bool(jnp.all(jnp.max(y_hard, axis=-1) == 1.0))

    print("KERNEL_OK")
</pallas_src>

<mosaic_0001>
module attributes {stable_mosaic.version = 11 : i64} {
  func.func @_gating_kernel(%arg0: i32, %arg1: memref<16x32xbf16, #tpu.memory_space<vmem>>, %arg2: memref<16x128xf32, #tpu.memory_space<vmem>>, %arg3: memref<32x32xbf16, #tpu.memory_space<vmem>>, %arg4: memref<1x32xf32, #tpu.memory_space<vmem>>, %arg5: memref<32x128xbf16, #tpu.memory_space<vmem>>, %arg6: memref<1x128xf32, #tpu.memory_space<vmem>>, %arg7: memref<16x128xf32, #tpu.memory_space<vmem>>) attributes {dimension_semantics = [#tpu.dimension_semantics<parallel>], iteration_bounds = array<i64: 1>, scalar_prefetch = 0 : i64, scratch_operands = 0 : i64, tpu.core_type = #tpu.core_type<tc>, window_params = [{transform_indices = @transform_0, window_bounds = array<i64: 16, 32>}, {transform_indices = @transform_1, window_bounds = array<i64: 16, 128>}, {pipeline_mode = #tpu.pipeline_mode<synchronous>, transform_indices = @transform_2, window_bounds = array<i64: 32, 32>}, {pipeline_mode = #tpu.pipeline_mode<synchronous>, transform_indices = @transform_3, window_bounds = array<i64: 1, 32>}, {pipeline_mode = #tpu.pipeline_mode<synchronous>, transform_indices = @transform_4, window_bounds = array<i64: 32, 128>}, {pipeline_mode = #tpu.pipeline_mode<synchronous>, transform_indices = @transform_5, window_bounds = array<i64: 1, 128>}, {transform_indices = @transform_6, window_bounds = array<i64: 16, 128>}]} {
    %c0 = arith.constant 0 : index
    %c0_0 = arith.constant 0 : index
    %0 = vector.load %arg1[%c0, %c0_0] : memref<16x32xbf16, #tpu.memory_space<vmem>>, vector<16x32xbf16>
    %c0_1 = arith.constant 0 : index
    %c0_2 = arith.constant 0 : index
    %1 = vector.load %arg3[%c0_1, %c0_2] : memref<32x32xbf16, #tpu.memory_space<vmem>>, vector<32x32xbf16>
    %cst = arith.constant dense<0.000000e+00> : vector<16x32xf32>
    %2 = tpu.matmul %0, %1, %cst {dimension_numbers = #tpu.dot_dimension_numbers<[1], [0], [0], [1], [0, 0, 1, 1], [], []>} : vector<16x32xbf16>, vector<32x32xbf16>, vector<16x32xf32> -> vector<16x32xf32>
    %c0_3 = arith.constant 0 : index
    %c0_4 = arith.constant 0 : index
    %3 = vector.load %arg4[%c0_3, %c0_4] : memref<1x32xf32, #tpu.memory_space<vmem>>, vector<1x32xf32>
    %4 = vector.broadcast %3 : vector<1x32xf32> to vector<16x32xf32>
    %5 = arith.addf %2, %4 : vector<16x32xf32>
    %cst_5 = arith.constant 0.000000e+00 : f32
    %6 = vector.broadcast %cst_5 : f32 to vector<16x32xf32>
    %7 = arith.maximumf %5, %6 : vector<16x32xf32>
    %8 = arith.truncf %7 : vector<16x32xf32> to vector<16x32xbf16>
    %c0_6 = arith.constant 0 : index
    %c0_7 = arith.constant 0 : index
    %9 = vector.load %arg5[%c0_6, %c0_7] : memref<32x128xbf16, #tpu.memory_space<vmem>>, vector<32x128xbf16>
    %cst_8 = arith.constant dense<0.000000e+00> : vector<16x128xf32>
    %10 = tpu.matmul %8, %9, %cst_8 {dimension_numbers = #tpu.dot_dimension_numbers<[1], [0], [0], [1], [0, 0, 1, 1], [], []>} : vector<16x32xbf16>, vector<32x128xbf16>, vector<16x128xf32> -> vector<16x128xf32>
    %c0_9 = arith.constant 0 : index
    %c0_10 = arith.constant 0 : index
    %11 = vector.load %arg6[%c0_9, %c0_10] : memref<1x128xf32, #tpu.memory_space<vmem>>, vector<1x128xf32>
    %12 = vector.broadcast %11 : vector<1x128xf32> to vector<16x128xf32>
    %13 = arith.addf %10, %12 : vector<16x128xf32>
    %c0_11 = arith.constant 0 : index
    %c0_12 = arith.constant 0 : index
    %14 = vector.load %arg2[%c0_11, %c0_12] : memref<16x128xf32, #tpu.memory_space<vmem>>, vector<16x128xf32>
    %cst_13 = arith.constant 9.99999971E-10 : f32
    %15 = vector.broadcast %cst_13 : f32 to vector<16x128xf32>
    %16 = arith.addf %14, %15 : vector<16x128xf32>
    %17 = math.log %16 : vector<16x128xf32>
    %cst_14 = arith.constant 0.000000e+00 : f32
    %18 = vector.broadcast %cst_14 : f32 to vector<16x128xf32>
    %19 = arith.subf %18, %17 : vector<16x128xf32>
    %cst_15 = arith.constant 9.99999971E-10 : f32
    %20 = vector.broadcast %cst_15 : f32 to vector<16x128xf32>
    %21 = arith.addf %19, %20 : vector<16x128xf32>
    %22 = math.log %21 : vector<16x128xf32>
    %cst_16 = arith.constant 0.000000e+00 : f32
    %23 = vector.broadcast %cst_16 : f32 to vector<16x128xf32>
    %24 = arith.subf %23, %22 : vector<16x128xf32>
    %25 = arith.addf %13, %24 : vector<16x128xf32>
    %cst_17 = arith.constant 1.000000e+00 : f32
    %26 = vector.broadcast %cst_17 : f32 to vector<16x128xf32>
    %27 = arith.mulf %25, %26 : vector<16x128xf32>
    %cst_18 = arith.constant dense<0xFF800000> : vector<16xf32>
    %28 = vector.multi_reduction <maximumf>, %27, %cst_18 [1] : vector<16x128xf32> to vector<16xf32>
    %29 = vector.shape_cast %28 : vector<16xf32> to vector<16x1xf32>
    %30 = vector.broadcast %29 : vector<16x1xf32> to vector<16x128xf32>
    %31 = arith.subf %27, %30 : vector<16x128xf32>
    %32 = math.exp %31 : vector<16x128xf32>
    %cst_19 = arith.constant dense<0.000000e+00> : vector<16xf32>
    %33 = vector.multi_reduction <add>, %32, %cst_19 [1] : vector<16x128xf32> to vector<16xf32>
    %34 = vector.shape_cast %33 : vector<16xf32> to vector<16x1xf32>
    %35 = vector.broadcast %34 : vector<16x1xf32> to vector<16x128xf32>
    %36 = arith.divf %32, %35 : vector<16x128xf32>
    %c0_20 = arith.constant 0 : index
    %c0_21 = arith.constant 0 : index
    %37 = vector.load %arg7[%c0_20, %c0_21] : memref<16x128xf32, #tpu.memory_space<vmem>>, vector<16x128xf32>
    tpu.vector_store %arg7[%c0_20, %c0_21], %36 {strides = array<i32>} : memref<16x128xf32, #tpu.memory_space<vmem>>, vector<16x128xf32>,
    return
  }
  func.func @transform_0(%arg0: i32) -> (i32, i32) {
    %c0_i32 = arith.constant 0 : i32
    %c0_i32_0 = arith.constant 0 : i32
    return %arg0, %c0_i32 : i32, i32
  }
  func.func @transform_1(%arg0: i32) -> (i32, i32) {
    %c0_i32 = arith.constant 0 : i32
    %c0_i32_0 = arith.constant 0 : i32
    return %arg0, %c0_i32 : i32, i32
  }
  func.func @transform_2(%arg0: i32) -> (i32, i32) {
    %c0_i32 = arith.constant 0 : i32
    %c0_i32_0 = arith.constant 0 : i32
    %c0_i32_1 = arith.constant 0 : i32
    return %c0_i32, %c0_i32_0 : i32, i32
  }
  func.func @transform_3(%arg0: i32) -> (i32, i32) {
    %c0_i32 = arith.constant 0 : i32
    %c0_i32_0 = arith.constant 0 : i32
    %c0_i32_1 = arith.constant 0 : i32
    return %c0_i32, %c0_i32_0 : i32, i32
  }
  func.func @transform_4(%arg0: i32) -> (i32, i32) {
    %c0_i32 = arith.constant 0 : i32
    %c0_i32_0 = arith.constant 0 : i32
    %c0_i32_1 = arith.constant 0 : i32
    return %c0_i32, %c0_i32_0 : i32, i32
  }
  func.func @transform_5(%arg0: i32) -> (i32, i32) {
    %c0_i32 = arith.constant 0 : i32
    %c0_i32_0 = arith.constant 0 : i32
    %c0_i32_1 = arith.constant 0 : i32
    return %c0_i32, %c0_i32_0 : i32, i32
  }
  func.func @transform_6(%arg0: i32) -> (i32, i32) {
    %c0_i32 = arith.constant 0 : i32
    %c0_i32_0 = arith.constant 0 : i32
    return %arg0, %c0_i32 : i32, i32
  }
}

</mosaic_0001>

<bundles_post_ra>
// kernel: tpu_custom_call.1
= control target key start
LH: loop header
LB: loop body
LE: loop exit
PB: predicated region body
PF: predicated region fallthrough
CT: control target
= control target key end

     0   :  { %11 = vsyncpa [#allocation3], 0  ;;  %s513_s0 = inlined_call_operand.hbm [shape: bf16[16,32], index: 0, kind: input, shape index: {}]   ;;  %s514_s1 = inlined_call_operand.hbm [shape: f32[16,128], index: 1, kind: input, shape index: {}]   ;;  %s515_s2 = inlined_call_operand.hbm [shape: bf16[32,32], index: 2, kind: input, shape index: {}]   ;;  %s516_s3 = inlined_call_operand.vmem [shape: f32[1,32], index: 3, kind: input, shape index: {}]   ;;  %s517_s4 = inlined_call_operand.hbm [shape: bf16[32,128], index: 4, kind: input, shape index: {}]   ;;  %s518_s5 = inlined_call_operand.vmem [shape: f32[1,128], index: 5, kind: input, shape index: {}]   ;;  %s519_s6 = inlined_call_operand.hbm [shape: f32[16,128], index: 6, kind: output, shape index: {}]  }
   0x1   :  { %12 = vsyncpa [#allocation6], 0 }
   0x2   :  { %13 = vsyncpa [#allocation9], 0  ;;  %s32_s23 = sshll.u32 %s514_s1, 4  ;;  %s33_s23 = int_to_ptr.hbm [resolvable:$true] %s32_s23 }
   0x3   :  { %14 = vsyncpa [#allocation4], 0  ;;  %s442_s24 = smov [#allocation5]   ;;  %s19_s28 = sshll.u32 %s513_s0, 4  ;;  %s20_s28 = int_to_ptr.hbm [resolvable:$true] %s19_s28 }
   0x4   :  { %s34_s25 = sshll.u32 %s442_s24, 4  ;;  %s443_s29 = smov 128   ;;  %s35_s25 = int_to_ptr.vmem [resolvable:$true] %s34_s25 }
   0x5   :  { %s444_s30 = smov 8   ;;  %s445_s7 = smov [#allocation2]  }
   0x6   :  { %40 = dma.hbm_to_vmem [thread:$0]  %s33_s23, 256, %s35_s25, [#allocation6], %s443_s29, %s443_s29, %s444_s30  }
   0x7   :  { %s21_s8 = sshll.u32 %s445_s7, 4  ;;  %s446_s1 = smov 64   ;;  %s22_s8 = int_to_ptr.vmem [resolvable:$true] %s21_s8 }
   0x8   :  { %s447_s9 = smov 4   ;;  %s45_s12 = sshll.u32 %s515_s2, 4  ;;  %s46_s12 = int_to_ptr.hbm [resolvable:$true] %s45_s12 }
   0x9   :  { %27 = dma.hbm_to_vmem [thread:$0]  %s20_s28, 128, %s22_s8, [#allocation3], %s446_s1, %s446_s1, %s447_s9  }
   0xa   :  { %s448_s13 = smov [#allocation7]   ;;  %s60_s16 = sshll.u32 %s517_s4, 4  ;;  %s61_s16 = int_to_ptr.hbm [resolvable:$true] %s60_s16 }
   0xb   :  { %s47_s0 = sshll.u32 %s448_s13, 4  ;;  %s449_s17 = smov [#allocation8]   ;;  %s48_s0 = int_to_ptr.vmem [resolvable:$true] %s47_s0 }
   0xc   :  { %53 = dma.hbm_to_vmem [thread:$0]  %s46_s12, 256, %s48_s0, [#allocation6], %s446_s1, %s446_s1, %s447_s9  }
   0xd   :  { %s62_s18 = sshll.u32 %s449_s17, 4  ;;  %s63_s18 = int_to_ptr.vmem [resolvable:$true] %s62_s18 }
   0xe   :  { %68 = dma.hbm_to_vmem [thread:$0]  %s61_s16, 256, %s63_s18, [#allocation9], %s446_s1, %s446_s1, %s447_s9  }
   0xf   :  { %434 = dma.done.wait [#allocation3], 128  }
  0x10   :  { %435 = vsyncadd [#allocation3], 4294967168 }
  0x11   :  { %436 = dma.done.wait [#allocation6], 512  }
  0x12   :  { %437 = vsyncadd [#allocation6], 4294966784 }
  0x13   :  { %438 = dma.done.wait [#allocation9], 256  }
  0x14   :  { %439 = vsyncadd [#allocation9], 4294967040  ;;  %v284_v0 = vld [vmem:[#allocation7 + $0x8] sm:$0xff]  ;;  %v283_v1 = vld [vmem:[#allocation7] sm:$0xff]  ;;  %vm115_vm0 = vcmask 261120   ;;  %s245_s23 = sshll.u32 %s519_s6, 4  ;;  %s246_s23 = int_to_ptr.hbm [resolvable:$true] %s245_s23 }
  0x15   :  { %125 = vmatpush.bf16.msra.mxu0 %v284_v0  ;;  %v282_v2 = vld [vmem:[#allocation2] sm:$0xff]  ;;  %v286_v3 = vld [vmem:[#allocation8 + $0x8] sm:$0xff]  ;;  %v285_v4 = vld [vmem:[#allocation8] sm:$0xff] }
  0x16   :  { %165 = vmatpush.bf16.msra.mxu1 %v286_v3  ;;  %v296_v6 = vld [vmem:[%s516_s3] ss:$0 sm:$0xff]  ;;  %v173_v13 = vld [vmem:[#allocation5] sm:$0xff]  ;;  %v174_v15 = vld [vmem:[#allocation5 + $0x8] sm:$0xff] }
  0x17   :  { %v175_v14 = vadd.f32 1e-09, %v173_v13  ;;  %v176_v16 = vadd.f32 1e-09, %v174_v15  ;;  %v297_v27 = vld [vmem:[%s518_s5] ss:$0 sm:$0xff] }
  0x18   :  { %s450_s5 = smov [#allocation10]  }
  0x19   :  { %126 = vmatpush.bf16.msra.mxu0 %v283_v1  ;;  %298 = vlog2.f32 %v175_v14  ;;  %s243_s20 = sshll.u32 %s450_s5, 4  ;;  %s244_s20 = int_to_ptr.vmem [resolvable:$true] %s243_s20 }
  0x1a   :  { %166 = vmatpush.bf16.msra.mxu1 %v285_v4  ;;  %300 = vlog2.f32 %v176_v16 }
  0x1c   :  { %272 = vmatmul.msk.bf16.vlgmr.msra.gmra.mxu0 %vm115_vm0, %v282_v2 }
  0x1f   :  { %v299_v17 = vpop.eup %298 }
  0x20   :  { %v178_v18 = vmul.f32 0.6931472, %v299_v17  ;;  %v301_v20 = vpop.eup %300 }
  0x21   :  { %v180_v22 = vmul.f32 0.6931472, %v301_v20 }
  0x22   :  { %v181_v19 = vsub.f32 0.0, %v178_v18 }
  0x23   :  { %v182_v23 = vsub.f32 0.0, %v180_v22 }
  0x24   :  { %v183_v21 = vadd.f32 1e-09, %v181_v19 }
  0x25   :  { %v184_v24 = vadd.f32 1e-09, %v182_v23 }
  0x26   :  { %302 = vlog2.f32 %v183_v21 }
  0x27   :  { %304 = vlog2.f32 %v184_v24 }
  0x2c   :  { %v303_v25 = vpop.eup %302 }
  0x2d   :  { %v186_v26 = vmul.f32 0.6931472, %v303_v25  ;;  %v305_v29 = vpop.eup %304 }
  0x2e   :  { %v188_v33 = vmul.f32 0.6931472, %v305_v29 }
  0x2f   :  { %v189_v28 = vsub.f32 0.0, %v186_v26 }
  0x30   :  { %v190_v34 = vsub.f32 0.0, %v188_v33 }
  0x99   :  { %v128_v5 = vpop.f32.mrf.mxu0 }
  0x9a   :  { %v129_v7 = vadd.f32 %v296_v6, %v128_v5 }
  0x9c   :  { %v133_v10 = vmax.f32 %v129_v7, 0.0 }
  0xa1   :  { %v130_v8 = vpop.f32.mrf.mxu0 }
  0xa2   :  { %v131_v9 = vadd.f32 %v296_v6, %v130_v8 }
  0xa4   :  { %v134_v11 = vmax.f32 %v131_v9, 0.0 }
  0xa6   :  { %v135_v12 = vpack.c.bf16 %v134_v11, %v133_v10 }
  0xa8   :  { %281 = vmatmul.msk.bf16.vlgmr.msra.gmra.mxu1 %vm115_vm0, %v135_v12 }
 0x125   :  { %v168_v30 = vpop.f32.mrf.mxu1 }
 0x126   :  { %v169_v31 = vadd.f32 %v297_v27, %v168_v30 }
 0x128   :  { %v191_v32 = vadd.f32 %v189_v28, %v169_v31 }
 0x12a   :  { %193 = vmax.xlane.f32.xlu0 %v191_v32 }
 0x12d   :  { %v170_v35 = vpop.f32.mrf.mxu1 }
 0x12e   :  { %v171_v36 = vadd.f32 %v297_v27, %v170_v35 }
 0x130   :  { %v192_v37 = vadd.f32 %v190_v34, %v171_v36 }
 0x132   :  { %195 = vmax.xlane.f32.xlu0 %v192_v37 }
 0x19d   :  { %v194_v38 = vpop.xlane.xlu0 %193 }
 0x19e   :  { %v197_v39 = vsub.f32 %v191_v32, %v194_v38 }
 0x1a0   :  { %v199_v40 = vmul.f32 1.442695, %v197_v39 }
 0x1a2   :  { %306 = vpow2.f32 %v199_v40 }
 0x1a5   :  { %v196_v41 = vpop.xlane.xlu0 %195 }
 0x1a6   :  { %v198_v42 = vsub.f32 %v192_v37, %v196_v41 }
 0x1a8   :  { %v307_v43 = vpop.eup %306  ;;  %v201_v44 = vmul.f32 1.442695, %v198_v42 }
 0x1a9   :  { %203 = vadd.xlane.f32.xlu1 %v307_v43 }
 0x1aa   :  { %308 = vpow2.f32 %v201_v44 }
 0x1b0   :  { %v309_v45 = vpop.eup %308 }
 0x1b1   :  { %205 = vadd.xlane.f32.xlu1 %v309_v45 }
 0x21c   :  { %v204_v46 = vpop.xlane.xlu1 %203 }
 0x21d   :  { %310 = vrcp.f32 %v204_v46  ;;  %v218_v51 = vand.u32 2147483648, %v204_v46  ;;  %v216_v53 = vand.u32 2147483647, %v204_v46  ;;  %vm212_vm2 = vweird.f32 %v204_v46 }
 0x21f   :  { %v219_v56 = vor.u32 1.1754944e-38, %v218_v51  ;;  %vm217_vm4 = vcmp.eq.f32.partialorder %v216_v53, 8.507059e+37 }
 0x223   :  { %v311_v47 = vpop.eup %310 }
 0x224   :  { %v208_v48 = vmul.f32 %v311_v47, %v204_v46  ;;  %v206_v49 = vpop.xlane.xlu1 %205  ;;  %vm213_vm1 = vweird.f32 %v311_v47 }
 0x225   :  { %312 = vrcp.f32 %v206_v49  ;;  %vm214_vm3 = vmor %vm212_vm2, %vm213_vm1  ;;  %v233_v62 = vand.u32 2147483648, %v206_v49  ;;  %v231_v0 = vand.u32 2147483647, %v206_v49  ;;  %vm227_vm6 = vweird.f32 %v206_v49 }
 0x226   :  { %v209_v50 = vsub.f32 1.0, %v208_v48 }
 0x227   :  { %v234_v2 = vor.u32 1.1754944e-38, %v233_v62  ;;  %vm232_vm8 = vcmp.eq.f32.partialorder %v231_v0, 8.507059e+37 }
 0x228   :  { %v210_v52 = vmul.f32 %v311_v47, %v209_v50 }
 0x22a   :  { %v211_v54 = vadd.f32 %v311_v47, %v210_v52 }
 0x22b   :  { %v313_v55 = vpop.eup %312 }
 0x22c   :  { %v223_v57 = vmul.f32 %v313_v55, %v206_v49  ;;  %v215_v58 = vsel %vm214_vm3, %v311_v47, %v211_v54  ;;  %vm228_vm5 = vweird.f32 %v313_v55 }
 0x22d   :  { %v220_v59 = vsel %vm217_vm4, %v219_v56, %v215_v58  ;;  %vm229_vm7 = vmor %vm227_vm6, %vm228_vm5 }
 0x22e   :  { %v224_v60 = vsub.f32 1.0, %v223_v57  ;;  %v221_v61 = vmul.f32 %v307_v43, %v220_v59 }
 0x230   :  { %v225_v63 = vmul.f32 %v313_v55, %v224_v60  ;;  %237 = vst [vmem:[#allocation10] sm:$0xff] %v221_v61 }
 0x232   :  { %v226_v1 = vadd.f32 %v313_v55, %v225_v63 }
 0x234   :  { %v230_v3 = vsel %vm229_vm7, %v313_v55, %v226_v1 }
 0x235   :  { %v235_v4 = vsel %vm232_vm8, %v234_v2, %v230_v3 }
 0x236   :  { %v236_v5 = vmul.f32 %v309_v45, %v235_v4 }
 0x238   :  { %238 = vst [vmem:[#allocation10 + $0x8] sm:$0xff] %v236_v5 }
 0x239   :  { %251 = dma.vmem_to_hbm [thread:$0]  %s244_s20, 256, %s246_s23, [#allocation4], %s443_s29, %s443_s29, %s444_s30  }
 0x23a   :  { %440 = dma.done.wait [#allocation4], 256  }
 0x23b   :  { %441 = vsyncadd [#allocation4], 4294967040 }
 0x23c   :  { %256 = vsyncpa [#allocation3], 1 }
 0x23d   :  { %257 = vsyncpa [#allocation6], 1 }
 0x23e   :  { %258 = vsyncpa [#allocation9], 1 }
 0x23f   :  { %259 = vsyncpa [#allocation4], 1 }

</bundles_post_ra>
